<compile_context>
chip_gen: v5e
topology: v5e:2x2
jax: 0.10.0
libtpu: 0.0.40
codegen_flags: <defaults>
</compile_context>

<pallas_src>
import functools

import jax
import jax.numpy as jnp
from jax.experimental import pallas as pl
from jax.experimental.pallas import tpu as pltpu

NEG_SLOPE = 0.2
BN_EPS_DEFAULT = 1e-5   # BatchNorm2d(128)
BN_EPS_GEN = 0.8        # BatchNorm2d(n, 0.8): second positional arg is eps
LANE = 128


# ---------------- small helpers ----------------

def _round_up(x, m):
    return ((x + m - 1) // m) * m


def _tile_m(m, cap=512):
    # Prefer the largest tile (<= cap) that divides M exactly so no row-pad
    # copy is needed; multiples of 16 keep f32 *and* bf16 blocks layout-legal.
    for t in (512, 256, 128, 64, 32, 16):
        if t <= cap and t <= m and m % t == 0:
            return t
    return min(cap, _round_up(m, 16))


def _pad_rows(x, mult):
    m = x.shape[0]
    mp = _round_up(m, mult)
    if mp != m:
        x = jnp.pad(x, ((0, mp - m), (0, 0)))
    return x


# ---------------- Pallas kernels ----------------

def _linear_stats_kernel(x_ref, w_ref, b_ref, y_ref, sum_ref, ssq_ref, *, groups):
    # bf16 x bf16 -> f32 accumulate on MXU, + bias (f32).  The output feature
    # order is (h, w, c) with c innermost (weights were permuted at init), so
    # each 128-lane group of the tile is one spatial position's channels; the
    # per-channel BN1 sums are accumulated here across the output-tile grid.
    y = jnp.dot(x_ref[...], w_ref[...], preferred_element_type=jnp.float32) + b_ref[...]
    y_ref[...] = y

    @pl.when(pl.program_id(0) == 0)
    def _():
        sum_ref[...] = jnp.zeros_like(sum_ref)
        ssq_ref[...] = jnp.zeros_like(ssq_ref)

    s = jnp.zeros((1, LANE), jnp.float32)
    q = jnp.zeros((1, LANE), jnp.float32)
    for g in range(groups):                      # static unroll, lane-aligned slices
        blk = y[:, g * LANE:(g + 1) * LANE]
        s = s + jnp.sum(blk, axis=0, keepdims=True)
        q = q + jnp.sum(blk * blk, axis=0, keepdims=True)
    sum_ref[...] += s
    ssq_ref[...] += q


def _gemm_stats_kernel(p_ref, w_ref, y_ref, sum_ref, ssq_ref):
    # conv GEMM (no bias: cancelled by following BN) + per-channel sum / sumsq
    # accumulated across the M grid axis (resident (1,O) accumulator outputs).
    y = jnp.dot(p_ref[...], w_ref[...], preferred_element_type=jnp.float32)
    y_ref[...] = y

    @pl.when(pl.program_id(0) == 0)
    def _():
        sum_ref[...] = jnp.zeros_like(sum_ref)
        ssq_ref[...] = jnp.zeros_like(ssq_ref)

    sum_ref[...] += jnp.sum(y, axis=0, keepdims=True)
    ssq_ref[...] += jnp.sum(y * y, axis=0, keepdims=True)


def _affine_kernel(y_ref, sc_ref, sh_ref, o_ref, *, leaky):
    # BN applied as y*scale + shift (scale/shift precomputed from batch stats),
    # optional LeakyReLU(0.2); output cast to bf16 for the next conv's patches.
    z = y_ref[...].astype(jnp.float32) * sc_ref[...] + sh_ref[...]
    if leaky:
        z = jnp.where(z > 0, z, NEG_SLOPE * z)
    o_ref[...] = z.astype(o_ref.dtype)


def _gemm_bias_tanh_kernel(p_ref, w_ref, b_ref, o_ref):
    y = jnp.dot(p_ref[...], w_ref[...], preferred_element_type=jnp.float32)
    o_ref[...] = jnp.tanh(y + b_ref[...])


# ---------------- pallas_call wrappers ----------------

def _linear_stats(x_bf16, w_bf16, b_f32):
    n, kp = x_bf16.shape
    o = w_bf16.shape[1]
    tile_o = next(t for t in (512, 256, 128) if o % t == 0)   # o is a multiple of 128
    groups = tile_o // LANE
    return pl.pallas_call(
        functools.partial(_linear_stats_kernel, groups=groups),
        out_shape=(jax.ShapeDtypeStruct((n, o), jnp.float32),
                   jax.ShapeDtypeStruct((1, LANE), jnp.float32),
                   jax.ShapeDtypeStruct((1, LANE), jnp.float32)),
        grid=(o // tile_o,),
        in_specs=[pl.BlockSpec((n, kp), lambda j: (0, 0)),
                  pl.BlockSpec((kp, tile_o), lambda j: (0, j)),
                  pl.BlockSpec((1, tile_o), lambda j: (0, j))],
        out_specs=(pl.BlockSpec((n, tile_o), lambda j: (0, j)),
                   pl.BlockSpec((1, LANE), lambda j: (0, 0)),
                   pl.BlockSpec((1, LANE), lambda j: (0, 0))),
        compiler_params=pltpu.CompilerParams(dimension_semantics=("arbitrary",)),
    )(x_bf16, w_bf16, b_f32)


def _gemm_stats(p_bf16, w_bf16):
    m, k = p_bf16.shape
    o = w_bf16.shape[1]
    tm = _tile_m(m)
    p = _pad_rows(p_bf16, tm)          # zero rows contribute 0 to sums
    mp = p.shape[0]
    y, s, q = pl.pallas_call(
        _gemm_stats_kernel,
        out_shape=(jax.ShapeDtypeStruct((mp, o), jnp.float32),
                   jax.ShapeDtypeStruct((1, o), jnp.float32),
                   jax.ShapeDtypeStruct((1, o), jnp.float32)),
        grid=(mp // tm,),
        in_specs=[pl.BlockSpec((tm, k), lambda i: (i, 0)),
                  pl.BlockSpec((k, o), lambda i: (0, 0))],
        out_specs=(pl.BlockSpec((tm, o), lambda i: (i, 0)),
                   pl.BlockSpec((1, o), lambda i: (0, 0)),
                   pl.BlockSpec((1, o), lambda i: (0, 0))),
        compiler_params=pltpu.CompilerParams(dimension_semantics=("arbitrary",)),
    )(p, w_bf16)
    return y[:m], s, q, m


def _affine(y_f32, scale, shift, *, leaky, out_dtype=jnp.bfloat16):
    m, o = y_f32.shape
    tm = _tile_m(m)
    y = _pad_rows(y_f32, tm)
    mp = y.shape[0]
    out = pl.pallas_call(
        functools.partial(_affine_kernel, leaky=leaky),
        out_shape=jax.ShapeDtypeStruct((mp, o), out_dtype),
        grid=(mp // tm,),
        in_specs=[pl.BlockSpec((tm, o), lambda i: (i, 0)),
                  pl.BlockSpec((1, o), lambda i: (0, 0)),
                  pl.BlockSpec((1, o), lambda i: (0, 0))],
        out_specs=pl.BlockSpec((tm, o), lambda i: (i, 0)),
        compiler_params=pltpu.CompilerParams(dimension_semantics=("parallel",)),
    )(y, scale, shift)
    return out[:m]


def _gemm_bias_tanh(p_bf16, w_bf16, b_f32):
    m, k = p_bf16.shape
    o = w_bf16.shape[1]
    tm = _tile_m(m)
    p = _pad_rows(p_bf16, tm)
    mp = p.shape[0]
    out = pl.pallas_call(
        _gemm_bias_tanh_kernel,
        out_shape=jax.ShapeDtypeStruct((mp, o), jnp.float32),
        grid=(mp // tm,),
        in_specs=[pl.BlockSpec((tm, k), lambda i: (i, 0)),
                  pl.BlockSpec((k, o), lambda i: (0, 0)),
                  pl.BlockSpec((1, o), lambda i: (0, 0))],
        out_specs=pl.BlockSpec((tm, o), lambda i: (i, 0)),
        compiler_params=pltpu.CompilerParams(dimension_semantics=("parallel",)),
    )(p, w_bf16, b_f32)
    return out[:m]


# ---------------- JAX-side glue (layout only) ----------------

def _upsample2x(x_nhwc):                       # nearest, matches nn.Upsample(2)
    x = jnp.repeat(x_nhwc, 2, axis=1)
    return jnp.repeat(x, 2, axis=2)


def _im2col_3x3(x_nhwc):
    # patches ordered (kh, kw, C) along K -> matches weights permuted to
    # (kh, kw, C, O) at init, so no big activation transpose is needed.
    n, h, w, c = x_nhwc.shape
    xp = jnp.pad(x_nhwc, ((0, 0), (1, 1), (1, 1), (0, 0)))
    cols = [xp[:, i:i + h, j:j + w, :] for i in range(3) for j in range(3)]
    return jnp.concatenate(cols, axis=-1).reshape(n * h * w, 9 * c)


def _bn_scale_shift(sum_, ssq, count, gamma, beta, eps):
    mean = sum_[0] / count
    var = jnp.maximum(ssq[0] / count - mean * mean, 0.0)   # biased (training-mode)
    scale = gamma * jax.lax.rsqrt(var + eps)
    shift = beta - mean * scale
    return scale.reshape(1, -1), shift.reshape(1, -1)


# ---------------- params ----------------

def init_params(z_dim, channel, img_size, n_classes, key):
    s = img_size // 4
    in_dim = z_dim + n_classes
    kp = _round_up(in_dim, LANE)
    ks = jax.random.split(key, 6)

    # PyTorch-layout parameters
    w_l1 = jax.random.normal(ks[0], (128 * s * s, in_dim), jnp.float32) * 0.05  # (out, in)
    b_l1 = jax.random.normal(ks[1], (128 * s * s,), jnp.float32) * 0.05
    w_c1 = jax.random.normal(ks[2], (128, 128, 3, 3), jnp.float32) * 0.05       # (O, C, kh, kw)
    w_c2 = jax.random.normal(ks[3], (64, 128, 3, 3), jnp.float32) * 0.05
    w_cf = jax.random.normal(ks[4], (channel, 64, 3, 3), jnp.float32) * 0.05
    b_cf = jax.random.normal(ks[5], (channel,), jnp.float32) * 0.05
    # conv1/conv2 biases are omitted: per-channel constants are exactly
    # cancelled by the training-mode BatchNorm mean subtraction that follows.

    # l1: permute output features from (C,H,W) to NHWC-flat (H,W,C) order and
    # pad K to a multiple of 128 lanes (one-time weight transform).
    w_l1_t = w_l1.reshape(128, s, s, in_dim).transpose(1, 2, 0, 3).reshape(128 * s * s, in_dim)
    w_l1_t = jnp.pad(w_l1_t.T, ((0, kp - in_dim), (0, 0)))              # (Kp, 128*s*s)
    b_l1_t = b_l1.reshape(128, s, s).transpose(1, 2, 0).reshape(1, 128 * s * s)

    def conv_w(w, pad_cin=0, pad_cout=0):
        # (O, C, kh, kw) -> (kh, kw, C, O), zero-pad channels, -> (9*Cp, Op)
        w = jnp.transpose(w, (2, 3, 1, 0))
        w = jnp.pad(w, ((0, 0), (0, 0), (0, pad_cin), (0, pad_cout)))
        kh, kw, c, o = w.shape
        return w.reshape(kh * kw * c, o)

    return {
        "w_l1": w_l1_t.astype(jnp.bfloat16),
        "b_l1": b_l1_t,
        "g1": jnp.ones((128,), jnp.float32), "bt1": jnp.zeros((128,), jnp.float32),
        "w_c1": conv_w(w_c1).astype(jnp.bfloat16),                      # (1152, 128)
        "g2": jnp.ones((128,), jnp.float32), "bt2": jnp.zeros((128,), jnp.float32),
        # conv2: output channels zero-padded 64 -> 128 for lane-dense stores
        "w_c2": conv_w(w_c2, pad_cout=128 - 64).astype(jnp.bfloat16),   # (1152, 128)
        "g3": jnp.ones((128,), jnp.float32),   # only first 64 are "real"; padded ch stay 0
        "bt3": jnp.zeros((128,), jnp.float32),
        # final conv: input channels padded 64 -> 128 (zeros), output channels
        # padded channel -> 128 (zeros); padded outputs sliced in the wrapper.
        "w_cf": conv_w(w_cf, pad_cin=128 - 64, pad_cout=128 - channel).astype(jnp.bfloat16),
        "b_cf": jnp.pad(b_cf, (0, 128 - channel)).reshape(1, 128),
    }


# ---------------- forward ----------------

def generator2_forward(z, labels, params, *, channel, img_size):
    n = z.shape[0]
    s = img_size // 4

    zc = jnp.concatenate([z, labels], axis=1).astype(jnp.float32)
    kp = params["w_l1"].shape[0]
    zc = jnp.pad(zc, ((0, 0), (0, kp - zc.shape[1]))).astype(jnp.bfloat16)

    # l1 (output already NHWC-flat) with fused BN1 per-channel batch stats
    y0, s0, q0 = _linear_stats(zc, params["w_l1"], params["b_l1"])
    y0 = y0.reshape(n * s * s, 128)

    # BatchNorm2d(128), training-mode batch stats, no activation
    sc, sh = _bn_scale_shift(s0, q0, float(n * s * s), params["g1"], params["bt1"], BN_EPS_DEFAULT)
    x = _affine(y0, sc, sh, leaky=False).reshape(n, s, s, 128)

    # Upsample -> Conv(128,128,3,1,1) -> BN(eps=0.8) -> LeakyReLU(0.2)
    x = _upsample2x(x)
    h = 2 * s
    p = _im2col_3x3(x)
    y1, s1, q1, m1 = _gemm_stats(p, params["w_c1"])
    sc, sh = _bn_scale_shift(s1, q1, float(m1), params["g2"], params["bt2"], BN_EPS_GEN)
    x = _affine(y1, sc, sh, leaky=True).reshape(n, h, h, 128)

    # Upsample -> Conv(128,64,3,1,1) -> BN(eps=0.8) -> LeakyReLU(0.2)
    # (output channels lane-padded 64 -> 128; padded channels stay exactly 0)
    x = _upsample2x(x)
    h = 4 * s
    p = _im2col_3x3(x)
    y2, s2, q2, m2 = _gemm_stats(p, params["w_c2"])
    sc, sh = _bn_scale_shift(s2, q2, float(m2), params["g3"], params["bt3"], BN_EPS_GEN)
    x = _affine(y2, sc, sh, leaky=True).reshape(n, h, h, 128)

    # final Conv(64 -> channel, 3,1,1) + Tanh
    p = _im2col_3x3(x)
    yf = _gemm_bias_tanh(p, params["w_cf"], params["b_cf"])
    img = yf[:, :channel].reshape(n, h, h, channel)
    return jnp.transpose(img, (0, 3, 1, 2))    # NCHW, matching PyTorch


if __name__ == "__main__":
    key = jax.random.PRNGKey(0)
    kz, kl, kprm = jax.random.split(key, 3)

    z_dim, n_classes, channel, img_size, batch = 32, 8, 3, 16, 2
    z = jax.random.normal(kz, (batch, z_dim), jnp.float32)
    labels = jax.nn.one_hot(
        jax.random.randint(kl, (batch,), 0, n_classes), n_classes).astype(jnp.float32)

    params = init_params(z_dim, channel, img_size, n_classes, kprm)
    img = generator2_forward(z, labels, params, channel=channel, img_size=img_size)
    img = jax.block_until_ready(img)

    assert img.shape == (batch, channel, img_size, img_size), img.shape
    assert jnp.isfinite(img).all()
    assert (jnp.abs(img) <= 1.0 + 1e-6).all()   # tanh output range
    print("KERNEL_OK")
</pallas_src>

<mosaic_0001>
module attributes {stable_mosaic.version = 11 : i64} {
  func.func @_linear_stats_kernel(%arg0: i32, %arg1: memref<2x128xbf16, #tpu.memory_space<vmem>>, %arg2: memref<128x512xbf16, #tpu.memory_space<vmem>>, %arg3: memref<1x512xf32, #tpu.memory_space<vmem>>, %arg4: memref<2x512xf32, #tpu.memory_space<vmem>>, %arg5: memref<1x128xf32, #tpu.memory_space<vmem>>, %arg6: memref<1x128xf32, #tpu.memory_space<vmem>>) attributes {dimension_semantics = [#tpu.dimension_semantics<arbitrary>], iteration_bounds = array<i64: 4>, scalar_prefetch = 0 : i64, scratch_operands = 0 : i64, tpu.core_type = #tpu.core_type<tc>, window_params = [{pipeline_mode = #tpu.pipeline_mode<synchronous>, transform_indices = @transform_0, window_bounds = array<i64: 2, 128>}, {transform_indices = @transform_1, window_bounds = array<i64: 128, 512>}, {transform_indices = @transform_2, window_bounds = array<i64: 1, 512>}, {transform_indices = @transform_3, window_bounds = array<i64: 2, 512>}, {pipeline_mode = #tpu.pipeline_mode<synchronous>, transform_indices = @transform_4, window_bounds = array<i64: 1, 128>}, {pipeline_mode = #tpu.pipeline_mode<synchronous>, transform_indices = @transform_5, window_bounds = array<i64: 1, 128>}]} {
    %c0 = arith.constant 0 : index
    %c0_0 = arith.constant 0 : index
    %0 = vector.load %arg1[%c0, %c0_0] : memref<2x128xbf16, #tpu.memory_space<vmem>>, vector<2x128xbf16>
    %c0_1 = arith.constant 0 : index
    %c0_2 = arith.constant 0 : index
    %1 = vector.load %arg2[%c0_1, %c0_2] : memref<128x512xbf16, #tpu.memory_space<vmem>>, vector<128x512xbf16>
    %cst = arith.constant dense<0.000000e+00> : vector<2x512xf32>
    %2 = tpu.matmul %0, %1, %cst {dimension_numbers = #tpu.dot_dimension_numbers<[1], [0], [0], [1], [0, 0, 1, 1], [], []>} : vector<2x128xbf16>, vector<128x512xbf16>, vector<2x512xf32> -> vector<2x512xf32>
    %c0_3 = arith.constant 0 : index
    %c0_4 = arith.constant 0 : index
    %3 = vector.load %arg3[%c0_3, %c0_4] : memref<1x512xf32, #tpu.memory_space<vmem>>, vector<1x512xf32>
    %4 = vector.broadcast %3 : vector<1x512xf32> to vector<2x512xf32>
    %5 = arith.addf %2, %4 : vector<2x512xf32>
    %c0_5 = arith.constant 0 : index
    %c0_6 = arith.constant 0 : index
    %6 = vector.load %arg4[%c0_5, %c0_6] : memref<2x512xf32, #tpu.memory_space<vmem>>, vector<2x512xf32>
    tpu.vector_store %arg4[%c0_5, %c0_6], %5 {strides = array<i32>} : memref<2x512xf32, #tpu.memory_space<vmem>>, vector<2x512xf32>,
    %c0_i32 = arith.constant 0 : i32
    %7 = arith.cmpi eq, %arg0, %c0_i32 : i32
    %8 = arith.extui %7 : i1 to i32
    %c0_i32_7 = arith.constant 0 : i32
    %9 = arith.cmpi ne, %8, %c0_i32_7 : i32
    scf.if %9 {
      %cst_26 = arith.constant 0.000000e+00 : f32
      %50 = vector.broadcast %cst_26 : f32 to vector<1x128xf32>
      %c0_27 = arith.constant 0 : index
      %c0_28 = arith.constant 0 : index
      %51 = vector.load %arg5[%c0_27, %c0_28] : memref<1x128xf32, #tpu.memory_space<vmem>>, vector<1x128xf32>
      tpu.vector_store %arg5[%c0_27, %c0_28], %50 {strides = array<i32>} : memref<1x128xf32, #tpu.memory_space<vmem>>, vector<1x128xf32>,
      %cst_29 = arith.constant 0.000000e+00 : f32
      %52 = vector.broadcast %cst_29 : f32 to vector<1x128xf32>
      %c0_30 = arith.constant 0 : index
      %c0_31 = arith.constant 0 : index
      %53 = vector.load %arg6[%c0_30, %c0_31] : memref<1x128xf32, #tpu.memory_space<vmem>>, vector<1x128xf32>
      tpu.vector_store %arg6[%c0_30, %c0_31], %52 {strides = array<i32>} : memref<1x128xf32, #tpu.memory_space<vmem>>, vector<1x128xf32>,
    } else {
    }
    %cst_8 = arith.constant 0.000000e+00 : f32
    %10 = vector.broadcast %cst_8 : f32 to vector<1x128xf32>
    %cst_9 = arith.constant 0.000000e+00 : f32
    %11 = vector.broadcast %cst_9 : f32 to vector<1x128xf32>
    %12 = vector.extract_strided_slice %5 {offsets = [0, 0], sizes = [2, 128], strides = [1, 1]} : vector<2x512xf32> to vector<2x128xf32>
    %cst_10 = arith.constant dense<0.000000e+00> : vector<128xf32>
    %13 = vector.multi_reduction <add>, %12, %cst_10 [0] : vector<2x128xf32> to vector<128xf32>
    %14 = vector.shape_cast %13 : vector<128xf32> to vector<1x128xf32>
    %15 = arith.addf %10, %14 : vector<1x128xf32>
    %16 = arith.mulf %12, %12 : vector<2x128xf32>
    %cst_11 = arith.constant dense<0.000000e+00> : vector<128xf32>
    %17 = vector.multi_reduction <add>, %16, %cst_11 [0] : vector<2x128xf32> to vector<128xf32>
    %18 = vector.shape_cast %17 : vector<128xf32> to vector<1x128xf32>
    %19 = arith.addf %11, %18 : vector<1x128xf32>
    %20 = vector.extract_strided_slice %5 {offsets = [0, 128], sizes = [2, 128], strides = [1, 1]} : vector<2x512xf32> to vector<2x128xf32>
    %cst_12 = arith.constant dense<0.000000e+00> : vector<128xf32>
    %21 = vector.multi_reduction <add>, %20, %cst_12 [0] : vector<2x128xf32> to vector<128xf32>
    %22 = vector.shape_cast %21 : vector<128xf32> to vector<1x128xf32>
    %23 = arith.addf %15, %22 : vector<1x128xf32>
    %24 = arith.mulf %20, %20 : vector<2x128xf32>
    %cst_13 = arith.constant dense<0.000000e+00> : vector<128xf32>
    %25 = vector.multi_reduction <add>, %24, %cst_13 [0] : vector<2x128xf32> to vector<128xf32>
    %26 = vector.shape_cast %25 : vector<128xf32> to vector<1x128xf32>
    %27 = arith.addf %19, %26 : vector<1x128xf32>
    %28 = vector.extract_strided_slice %5 {offsets = [0, 256], sizes = [2, 128], strides = [1, 1]} : vector<2x512xf32> to vector<2x128xf32>
    %cst_14 = arith.constant dense<0.000000e+00> : vector<128xf32>
    %29 = vector.multi_reduction <add>, %28, %cst_14 [0] : vector<2x128xf32> to vector<128xf32>
    %30 = vector.shape_cast %29 : vector<128xf32> to vector<1x128xf32>
    %31 = arith.addf %23, %30 : vector<1x128xf32>
    %32 = arith.mulf %28, %28 : vector<2x128xf32>
    %cst_15 = arith.constant dense<0.000000e+00> : vector<128xf32>
    %33 = vector.multi_reduction <add>, %32, %cst_15 [0] : vector<2x128xf32> to vector<128xf32>
    %34 = vector.shape_cast %33 : vector<128xf32> to vector<1x128xf32>
    %35 = arith.addf %27, %34 : vector<1x128xf32>
    %36 = vector.extract_strided_slice %5 {offsets = [0, 384], sizes = [2, 128], strides = [1, 1]} : vector<2x512xf32> to vector<2x128xf32>
    %cst_16 = arith.constant dense<0.000000e+00> : vector<128xf32>
    %37 = vector.multi_reduction <add>, %36, %cst_16 [0] : vector<2x128xf32> to vector<128xf32>
    %38 = vector.shape_cast %37 : vector<128xf32> to vector<1x128xf32>
    %39 = arith.addf %31, %38 : vector<1x128xf32>
    %40 = arith.mulf %36, %36 : vector<2x128xf32>
    %cst_17 = arith.constant dense<0.000000e+00> : vector<128xf32>
    %41 = vector.multi_reduction <add>, %40, %cst_17 [0] : vector<2x128xf32> to vector<128xf32>
    %42 = vector.shape_cast %41 : vector<128xf32> to vector<1x128xf32>
    %43 = arith.addf %35, %42 : vector<1x128xf32>
    %c0_18 = arith.constant 0 : index
    %c0_19 = arith.constant 0 : index
    %44 = vector.load %arg5[%c0_18, %c0_19] : memref<1x128xf32, #tpu.memory_space<vmem>>, vector<1x128xf32>
    %45 = arith.addf %44, %39 : vector<1x128xf32>
    %c0_20 = arith.constant 0 : index
    %c0_21 = arith.constant 0 : index
    %46 = vector.load %arg5[%c0_20, %c0_21] : memref<1x128xf32, #tpu.memory_space<vmem>>, vector<1x128xf32>
    tpu.vector_store %arg5[%c0_20, %c0_21], %45 {strides = array<i32>} : memref<1x128xf32, #tpu.memory_space<vmem>>, vector<1x128xf32>,
    %c0_22 = arith.constant 0 : index
    %c0_23 = arith.constant 0 : index
    %47 = vector.load %arg6[%c0_22, %c0_23] : memref<1x128xf32, #tpu.memory_space<vmem>>, vector<1x128xf32>
    %48 = arith.addf %47, %43 : vector<1x128xf32>
    %c0_24 = arith.constant 0 : index
    %c0_25 = arith.constant 0 : index
    %49 = vector.load %arg6[%c0_24, %c0_25] : memref<1x128xf32, #tpu.memory_space<vmem>>, vector<1x128xf32>
    tpu.vector_store %arg6[%c0_24, %c0_25], %48 {strides = array<i32>} : memref<1x128xf32, #tpu.memory_space<vmem>>, vector<1x128xf32>,
    return
  }
  func.func @transform_0(%arg0: i32) -> (i32, i32) {
    %c0_i32 = arith.constant 0 : i32
    %c0_i32_0 = arith.constant 0 : i32
    %c0_i32_1 = arith.constant 0 : i32
    return %c0_i32, %c0_i32_0 : i32, i32
  }
  func.func @transform_1(%arg0: i32) -> (i32, i32) {
    %c0_i32 = arith.constant 0 : i32
    %c0_i32_0 = arith.constant 0 : i32
    return %c0_i32, %arg0 : i32, i32
  }
  func.func @transform_2(%arg0: i32) -> (i32, i32) {
    %c0_i32 = arith.constant 0 : i32
    %c0_i32_0 = arith.constant 0 : i32
    return %c0_i32, %arg0 : i32, i32
  }
  func.func @transform_3(%arg0: i32) -> (i32, i32) {
    %c0_i32 = arith.constant 0 : i32
    %c0_i32_0 = arith.constant 0 : i32
    return %c0_i32, %arg0 : i32, i32
  }
  func.func @transform_4(%arg0: i32) -> (i32, i32) {
    %c0_i32 = arith.constant 0 : i32
    %c0_i32_0 = arith.constant 0 : i32
    %c0_i32_1 = arith.constant 0 : i32
    return %c0_i32, %c0_i32_0 : i32, i32
  }
  func.func @transform_5(%arg0: i32) -> (i32, i32) {
    %c0_i32 = arith.constant 0 : i32
    %c0_i32_0 = arith.constant 0 : i32
    %c0_i32_1 = arith.constant 0 : i32
    return %c0_i32, %c0_i32_0 : i32, i32
  }
}

</mosaic_0001>

<bundles_post_ra>
// kernel: tpu_custom_call.1
= control target key start
LH: loop header
LB: loop body
LE: loop exit
PB: predicated region body
PF: predicated region fallthrough
CT: control target
= control target key end

     0   :  { %s1605_s0 = inlined_call_operand.hbm [shape: bf16[2,128], index: 0, kind: input, shape index: {}]   ;;  %s1606_s1 = inlined_call_operand.hbm [shape: bf16[128,2048], index: 1, kind: input, shape index: {}]   ;;  %s1607_s2 = inlined_call_operand.hbm [shape: f32[1,2048], index: 2, kind: input, shape index: {}]   ;;  %s1608_s3 = inlined_call_operand.hbm [shape: f32[2,2048], index: 3, kind: output, shape index: {0}]   ;;  %s1609_s4 = inlined_call_operand.hbm [shape: f32[1,128], index: 4, kind: output, shape index: {1}]   ;;  %s1610_s5 = inlined_call_operand.hbm [shape: f32[1,128], index: 5, kind: output, shape index: {2}]  }
   0x1   :  { %1612 = sst [smem:[#allocation17_spill]] %s1605_s0 }
   0x2   :  { %1613 = sst [smem:[#allocation18_spill]] %s1606_s1 }
   0x3   :  { %11 = vsyncpa [#allocation3], 0 }
   0x4   :  { %12 = vsyncpa [#allocation6], 0 }
   0x5   :  { %14 = vsyncpa [#allocation6 + $0x1], 0 }
   0x6   :  { %15 = vsyncpa [#allocation4], 0 }
   0x7   :  { %17 = vsyncpa [#allocation4 + $0x1], 0 }
   0x8   :  { %18 = vsyncpa [#allocation10], 0  ;;  %s1336_s18 = smov 0   ;;  %s1338_s19 = smov 0  }
   0x9   :  { %s1340_s20 = smov 0   ;;  %s1342_s21 = smov 0  }
   0xa LB: > { %s1357_s22 = sadd.s32 1, %s1297_s21   ;;  %s52_s23 = sadd.s32 1, %s1293_s20  ;;  %s1297_s21 = sphi %s1342_s21, %s1631_s21   ;;  %s1293_s20 = sphi %s1340_s20, %s1630_s20   ;;  %s1289_s19 = sphi %s1338_s19, %s1629_s19   ;;  %s1285_s18 = sphi %s1336_s18, %s1628_s18  }
   0xb   : > { %s49_s24 = ssub.s32 %s1297_s21, %s1357_s22  ;;  %p59_p0 = scmp.ne.s32.totalorder %s1293_s20, %s1289_s19 }
   0xc   : > { %p50_p1 = scmp.eq.s32.totalorder %s49_s24, 0  ;;  %p60_p2 = scmp.eq.s32.totalorder %s1297_s21, 0 }
   0xd   : > { %p1031_p3 = scmp.lt.s32.totalorder %s1297_s21, 4  ;;  %s195_s26 = sand.u32 1, %s1297_s21  }
   0xe   : > { %s1367_s25 = scalar_select %p50_p1, %s1293_s20, %s52_s23  }
   0xf   : > { %p61_p4 = por %p60_p2, %p59_p0  ;;  %s197_s27 = sand.u32 1, %s1293_s20  }
  0x10   : > { %1614 = sst [smem:[#allocation16_spill]] %s1367_s25  ;;  %s815_s28 = sshll.u32 %s197_s27, 8 }
  0x11   : > { %s963_s29 = sshll.u32 %s1297_s21, 4  ;;  %s1615_s1 = sld [smem:[#allocation18_spill]] }
  0x12   : > { %s199_s9 = scalar_lea.vmem [#allocation5], %s815_s28  ;;  %p1382_p5 = pnand %p1031_p3, %p61_p4 }
  0x13   : > { %s207_s10 = sshll.u32 %s199_s9, 4  ;;  %s1386_s12 = scalar_lea.sflag [#allocation6], %s195_s26  ;;  %s208_s10 = int_to_ptr.vmem [resolvable:$true] %s207_s10 }
  0x14   : > { %p1081_p7 = pneg %p1382_p5 }
  0x17   : > { %s204_s7 = scalar_lea.hbm %s1615_s1, %s963_s29  ;;  %s1084_s17 = scalar_lea.hbm %s1615_s1, 1024 }
  0x18   : > { %s205_s8 = sshll.u32 %s204_s7, 4  ;;  %s206_s8 = int_to_ptr.hbm [resolvable:$true] %s205_s8 }
  0x19   : > { %s1077_s13 = sshra.s32 %s206_s8, 4  ;;  %s1078_s13 = int_to_ptr.hbm [resolvable:$true] %s1077_s13 }
  0x1a   : > { %s1079_s14 = scalar_lea.hbm %s1078_s13, 256  ;;  %p1085_p10 = scmp.lt.s32.totalorder %s1078_s13, %s1615_s1 }
  0x1b   : > { %p1080_p6 = scmp.ne.s32.totalorder %s1078_s13, %s1079_s14  ;;  %p1086_p11 = scmp.lt.s32.totalorder %s1084_s17, %s1079_s14 }
  0x1d   : > { %p1082_p8 = pnand %p1081_p7, %p1080_p6  ;;  %p1087_p12 = por %p1086_p11, %p1085_p10 }
  0x1f   : > { %p1083_p9 = pneg %p1082_p8 }
  0x21   : > { %p1088_p13 = pnand %p1087_p12, %p1083_p9 }
  0x23   : > { %1091 = shalt.err (!%p1088_p13)
}
  0x24   : > { %s1299_s26 = smov 1024   ;;  %s1300_s28 = smov 256  }
  0x25   : > { %s1301_s29 = smov 16   ;;  %s1403_s30 = sadd.s32 4294967295, %s1297_s21  }
  0x26   : > { %1022 = dma.hbm_to_vmem [thread:$0]  (!%p1382_p5), %s206_s8, 4096, %s208_s10, %s1386_s12, %s1299_s26, %s1300_s28, %s1301_s29  }
  0x27   : > { %s811_s6 = sadd.s32 4294967294, %s1297_s21   ;;  %p65_p1 = scmp.ne.s32.totalorder %s1289_s19, %s1285_s18 }
  0x28   : > { %p66_p2 = scmp.eq.s32.totalorder %s1403_s30, 0  ;;  %p1611_p3 = scmp.eq.s32.totalorder %s1403_s30, 3 }
  0x29   : > { %p121_p4 = scmp.eq.s32.totalorder %s811_s6, 3  ;;  %p812_p6 = scmp.ge.s32.totalorder %s1297_s21, 1 }
  0x2a   : > { %p1413_p8 = por %p66_p2, %p65_p1  ;;  %p1422_p9 = por %p1611_p3, %p59_p0 }
  0x2b   : > { %p1426_p10 = por %p121_p4, %p65_p1  ;;  %p170_p11 = scmp.lt.s32.totalorder %s1297_s21, 5 }
  0x2c   : > { %s1620_s0 = sld [smem:[#allocation17_spill]]  ;;  %s818_s16 = sshll.u32 %s197_s27, 2 }
  0x2d   : > { %p1435_p13 = pnand %p812_p6, %p170_p11  ;;  %s1302_s17 = smov [#allocation2]  }
  0x2e   : > { %s184_s23 = sshll.u32 %s1302_s17, 4  ;;  %s819_s24 = sshll.u32 %s1297_s21, 2  ;;  %s185_s23 = int_to_ptr.vmem [resolvable:$true] %s184_s23 }
  0x2f   : > { %p1015_p0 = pneg %p1435_p13  ;;  %s225_s29 = scalar_lea.hbm %s1607_s2, %s819_s24 }
  0x30   : > { %s221_s6 = scalar_lea.vmem [#allocation7], %s818_s16  ;;  %s227_s13 = sshll.u32 %s225_s29, 4  ;;  %s228_s13 = int_to_ptr.hbm [resolvable:$true] %s227_s13 }
  0x31   : > { %p1016_p1 = pnand %p1015_p0, %p66_p2  ;;  %s229_s10 = sshll.u32 %s221_s6, 4  ;;  %s230_s10 = int_to_ptr.vmem [resolvable:$true] %s229_s10 }
  0x32   : > { %s182_s14 = sshll.u32 %s1620_s0, 4  ;;  %s1137_s27 = sshra.s32 %s228_s13, 4  ;;  %s183_s14 = int_to_ptr.hbm [resolvable:$true] %s182_s14  ;;  %s1138_s27 = int_to_ptr.hbm [resolvable:$true] %s1137_s27 }
  0x33   : > { %1018 = dma.hbm_to_vmem [thread:$0]  (!%p1016_p1), %s183_s14, 16, %s185_s23, [#allocation3]  }
  0x34   : > { %s1139_s0 = scalar_lea.hbm %s1138_s27, 4  ;;  %s1144_s25 = scalar_lea.hbm %s1607_s2, 16 }
  0x35   : > { %p1140_p4 = scmp.ne.s32.totalorder %s1138_s27, %s1139_s0  ;;  %p1145_p0 = scmp.lt.s32.totalorder %s1138_s27, %s1607_s2 }
  0x36   : > { %p1146_p3 = scmp.lt.s32.totalorder %s1144_s25, %s1139_s0 }
  0x37   : > { %p1142_p6 = pnand %p1140_p4, %p1081_p7 }
  0x38   : > { %p1147_p1 = por %p1146_p3, %p1145_p0 }
  0x39   : > { %p1143_p11 = pneg %p1142_p6 }
  0x3b   : > { %p1148_p12 = pnand %p1147_p1, %p1143_p11 }
  0x3d   : > { %1151 = shalt.err (!%p1148_p12)
}
  0x3e   : > { %1025 = dma.hbm_to_vmem [thread:$0]  (!%p1382_p5), %s228_s13, 64, %s230_s10, %s1386_s12  }
  0x3f   : > { %238 = sbr.rel (%p1435_p13) target bundleno = 287 (0x11f), region = 32 }
  0x44   : > { %1268 = dma.done.wait (%p66_p2), [#allocation3], 16  }
  0x45   : > { %1270 = vsyncadd (%p66_p2), [#allocation3], 4294967280  ;;  %s245_s0 = sand.u32 1, %s1403_s30   ;;  %s1469_s1 = sand.u32 1, %s1289_s19  }
  0x46   : > { %s822_s25 = sshll.u32 %s1469_s1, 8  ;;  %s246_s11 = scalar_lea.sflag [#allocation6], %s245_s0 }
  0x47   : > { %s1472_s14 = scalar_lea.vmem [#allocation5], %s822_s25 }
  0x48   : > { %1272 = dma.done.wait (%p1413_p8), %s246_s11, 4160  }
  0x49   : > { %1274 = vsyncadd (%p1413_p8), %s246_s11, 4294963136  ;;  %v939_v0 = vld [vmem:[%s1472_s14 + $0xe0] sm:$0xf]  ;;  %v994_v1 = vld [vmem:[%s1472_s14 + $0xec] sm:$0xf0]  ;;  %s823_s12 = sshll.u32 %s1469_s1, 2 }
  0x4a   : > { %v992_v2 = vld [vmem:[%s1472_s14 + $0xe4] sm:$0xf]  ;;  %v940_v3 = vor.u32 %v994_v1, %v939_v0  ;;  %v941_v4 = vld [vmem:[%s1472_s14 + $0xf0] sm:$0xf0]  ;;  %v947_v5 = vld [vmem:[%s1472_s14 + $0xe8] sm:$0xf] }
  0x4b   : > { %v995_v6 = vld [vmem:[%s1472_s14 + $0xf4] sm:$0xf0]  ;;  %v944_v7 = vor.u32 %v992_v2, %v941_v4  ;;  %v993_v9 = vld [vmem:[%s1472_s14 + $0xec] sm:$0xf]  ;;  %v949_v10 = vld [vmem:[%s1472_s14 + $0xf8] sm:$0xf0] }
  0x4c   : > { %v948_v8 = vor.u32 %v995_v6, %v947_v5  ;;  %v923_v11 = vld [vmem:[%s1472_s14 + $0xc0] sm:$0xf]  ;;  %498 = vmatpush.bf16.msra.mxu0 %v940_v3  ;;  %v952_v12 = vor.u32 %v993_v9, %v949_v10  ;;  %v990_v13 = vld [vmem:[%s1472_s14 + $0xcc] sm:$0xf0]  ;;  %v988_v14 = vld [vmem:[%s1472_s14 + $0xc4] sm:$0xf] }
  0x4d   : > { %v925_v15 = vld [vmem:[%s1472_s14 + $0xd0] sm:$0xf0]  ;;  %511 = vmatpush.bf16.msra.mxu1 %v944_v7  ;;  %v924_v16 = vor.u32 %v990_v13, %v923_v11  ;;  %v931_v18 = vld [vmem:[%s1472_s14 + $0xc8] sm:$0xf]  ;;  %v991_v19 = vld [vmem:[%s1472_s14 + $0xd4] sm:$0xf0] }
  0x4e   : > { %524 = vmatpush.bf16.msra.mxu2 %v948_v8  ;;  %v928_v17 = vor.u32 %v988_v14, %v925_v15  ;;  %v989_v20 = vld [vmem:[%s1472_s14 + $0xcc] sm:$0xf]  ;;  %537 = vmatpush.bf16.msra.mxu3 %v952_v12  ;;  %v932_v21 = vor.u32 %v991_v19, %v931_v18  ;;  %v933_v22 = vld [vmem:[%s1472_s14 + $0xd8] sm:$0xf0]  ;;  %v907_v23 = vld [vmem:[%s1472_s14 + $0xa0] sm:$0xf] }
  0x4f   : > { %v986_v24 = vld [vmem:[%s1472_s14 + $0xac] sm:$0xf0]  ;;  %v936_v25 = vor.u32 %v989_v20, %v933_v22  ;;  %v984_v26 = vld [vmem:[%s1472_s14 + $0xa4] sm:$0xf]  ;;  %v909_v27 = vld [vmem:[%s1472_s14 + $0xb0] sm:$0xf0] }
  0x50   : > { %v915_v28 = vld [vmem:[%s1472_s14 + $0xa8] sm:$0xf]  ;;  %499 = vmatpush.bf16.msra.mxu0 %v924_v16  ;;  %v908_v29 = vor.u32 %v986_v24, %v907_v23  ;;  %v987_v30 = vld [vmem:[%s1472_s14 + $0xb4] sm:$0xf0]  ;;  %v985_v31 = vld [vmem:[%s1472_s14 + $0xac] sm:$0xf]  ;;  %v912_v33 = vor.u32 %v984_v26, %v909_v27 }
  0x51   : > { %v917_v32 = vld [vmem:[%s1472_s14 + $0xb8] sm:$0xf0]  ;;  %512 = vmatpush.bf16.msra.mxu1 %v928_v17  ;;  %v916_v34 = vor.u32 %v987_v30, %v915_v28  ;;  %v891_v35 = vld [vmem:[%s1472_s14 + $0x80] sm:$0xf]  ;;  %v982_v36 = vld [vmem:[%s1472_s14 + $0x8c] sm:$0xf0] }
  0x52   : > { %525 = vmatpush.bf16.msra.mxu2 %v932_v21  ;;  %v980_v37 = vld [vmem:[%s1472_s14 + $0x84] sm:$0xf]  ;;  %538 = vmatpush.bf16.msra.mxu3 %v936_v25  ;;  %v920_v38 = vor.u32 %v985_v31, %v917_v32  ;;  %v893_v39 = vld [vmem:[%s1472_s14 + $0x90] sm:$0xf0]  ;;  %v899_v40 = vld [vmem:[%s1472_s14 + $0x88] sm:$0xf]  ;;  %v892_v44 = vor.u32 %v982_v36, %v891_v35 }
  0x53   : > { %v983_v41 = vld [vmem:[%s1472_s14 + $0x94] sm:$0xf0]  ;;  %v981_v42 = vld [vmem:[%s1472_s14 + $0x8c] sm:$0xf]  ;;  %v901_v43 = vld [vmem:[%s1472_s14 + $0x98] sm:$0xf0]  ;;  %v896_v45 = vor.u32 %v980_v37, %v893_v39 }
  0x54   : > { %500 = vmatpush.bf16.msra.mxu0 %v908_v29  ;;  %v900_v46 = vor.u32 %v983_v41, %v899_v40  ;;  %v875_v47 = vld [vmem:[%s1472_s14 + $0x60] sm:$0xf]  ;;  %v978_v48 = vld [vmem:[%s1472_s14 + $0x6c] sm:$0xf0]  ;;  %v976_v49 = vld [vmem:[%s1472_s14 + $0x64] sm:$0xf]  ;;  %v904_v50 = vor.u32 %v981_v42, %v901_v43 }
  0x55   : > { %513 = vmatpush.bf16.msra.mxu1 %v912_v33  ;;  %v877_v51 = vld [vmem:[%s1472_s14 + $0x70] sm:$0xf0]  ;;  %v883_v52 = vld [vmem:[%s1472_s14 + $0x68] sm:$0xf]  ;;  %v979_v53 = vld [vmem:[%s1472_s14 + $0x74] sm:$0xf0]  ;;  %v876_v56 = vor.u32 %v978_v48, %v875_v47 }
  0x56   : > { %526 = vmatpush.bf16.msra.mxu2 %v916_v34  ;;  %539 = vmatpush.bf16.msra.mxu3 %v920_v38  ;;  %v977_v54 = vld [vmem:[%s1472_s14 + $0x6c] sm:$0xf]  ;;  %v885_v55 = vld [vmem:[%s1472_s14 + $0x78] sm:$0xf0]  ;;  %v880_v57 = vor.u32 %v976_v49, %v877_v51  ;;  %v884_v58 = vor.u32 %v979_v53, %v883_v52  ;;  %v859_v59 = vld [vmem:[%s1472_s14 + $0x40] sm:$0xf] }
  0x57   : > { %v974_v60 = vld [vmem:[%s1472_s14 + $0x4c] sm:$0xf0]  ;;  %v972_v61 = vld [vmem:[%s1472_s14 + $0x44] sm:$0xf]  ;;  %v888_v62 = vor.u32 %v977_v54, %v885_v55  ;;  %v861_v63 = vld [vmem:[%s1472_s14 + $0x50] sm:$0xf0] }
  0x58   : > { %501 = vmatpush.bf16.msra.mxu0 %v892_v44  ;;  %v867_v0 = vld [vmem:[%s1472_s14 + $0x48] sm:$0xf]  ;;  %v975_v1 = vld [vmem:[%s1472_s14 + $0x54] sm:$0xf0]  ;;  %v973_v2 = vld [vmem:[%s1472_s14 + $0x4c] sm:$0xf]  ;;  %v860_v4 = vor.u32 %v974_v60, %v859_v59  ;;  %v864_v5 = vor.u32 %v972_v61, %v861_v63 }
  0x59   : > { %514 = vmatpush.bf16.msra.mxu1 %v896_v45  ;;  %v869_v3 = vld [vmem:[%s1472_s14 + $0x58] sm:$0xf0]  ;;  %v868_v6 = vor.u32 %v975_v1, %v867_v0  ;;  %v843_v7 = vld [vmem:[%s1472_s14 + $0x20] sm:$0xf]  ;;  %v970_v8 = vld [vmem:[%s1472_s14 + $0x2c] sm:$0xf0] }
  0x5a   : > { %527 = vmatpush.bf16.msra.mxu2 %v900_v46  ;;  %540 = vmatpush.bf16.msra.mxu3 %v904_v50  ;;  %v968_v9 = vld [vmem:[%s1472_s14 + $0x24] sm:$0xf]  ;;  %v872_v10 = vor.u32 %v973_v2, %v869_v3  ;;  %v845_v11 = vld [vmem:[%s1472_s14 + $0x30] sm:$0xf0]  ;;  %v851_v12 = vld [vmem:[%s1472_s14 + $0x28] sm:$0xf]  ;;  %v844_v16 = vor.u32 %v970_v8, %v843_v7 }
  0x5b   : > { %v971_v13 = vld [vmem:[%s1472_s14 + $0x34] sm:$0xf0]  ;;  %v969_v14 = vld [vmem:[%s1472_s14 + $0x2c] sm:$0xf]  ;;  %v853_v15 = vld [vmem:[%s1472_s14 + $0x38] sm:$0xf0]  ;;  %v848_v17 = vor.u32 %v968_v9, %v845_v11 }
  0x5c   : > { %502 = vmatpush.bf16.msra.mxu0 %v876_v56  ;;  %v852_v18 = vor.u32 %v971_v13, %v851_v12  ;;  %v827_v19 = vld [vmem:[%s1472_s14] sm:$0xf]  ;;  %v966_v20 = vld [vmem:[%s1472_s14 + $0xc] sm:$0xf0]  ;;  %v964_v21 = vld [vmem:[%s1472_s14 + $0x4] sm:$0xf]  ;;  %v856_v22 = vor.u32 %v969_v14, %v853_v15 }
  0x5d   : > { %515 = vmatpush.bf16.msra.mxu1 %v880_v57  ;;  %v829_v23 = vld [vmem:[%s1472_s14 + $0x10] sm:$0xf0]  ;;  %v835_v24 = vld [vmem:[%s1472_s14 + $0x8] sm:$0xf]  ;;  %v967_v25 = vld [vmem:[%s1472_s14 + $0x14] sm:$0xf0]  ;;  %v828_v28 = vor.u32 %v966_v20, %v827_v19 }
  0x5e   : > { %528 = vmatpush.bf16.msra.mxu2 %v884_v58  ;;  %541 = vmatpush.bf16.msra.mxu3 %v888_v62  ;;  %v965_v26 = vld [vmem:[%s1472_s14 + $0xc] sm:$0xf]  ;;  %v837_v27 = vld [vmem:[%s1472_s14 + $0x18] sm:$0xf0]  ;;  %v832_v29 = vor.u32 %v964_v21, %v829_v23  ;;  %v836_v30 = vor.u32 %v967_v25, %v835_v24  ;;  %s259_s7 = scalar_lea.vmem [#allocation7], %s823_s12  ;;  %s824_s15 = sshll.u32 %s1469_s1, 3 }
  0x5f   : > { %v840_v31 = vor.u32 %v965_v26, %v837_v27  ;;  %v295_v32 = vld [vmem:[#allocation2] sm:$0x1]  ;;  %v328_v33 = vld [vmem:[%s259_s7] sm:$0xf]  ;;  %vm557_vm0 = vcmask 1041408   ;;  %vm559_vm1 = vcmask 1045508  }
  0x60   : > { %503 = vmatpush.bf16.msra.mxu0 %v860_v4  ;;  %v331_v35 = vperm.slane %v328_v33, 1  ;;  %v332_v37 = vperm.slane %v328_v33, 2  ;;  %v330_v38 = vperm.slane %v328_v33, 0  ;;  %v333_v40 = vperm.slane %v328_v33, 3  ;;  %s1545_s16 = scalar_lea.vmem [#allocation8], %s824_s15  ;;  %p1622_p5 = scmp.ne.s32.totalorder %s1403_s30, 0 }
  0x61   : > { %516 = vmatpush.bf16.msra.mxu1 %v864_v5  ;;  %vm561_vm2 = vcmask 1043456  }
  0x62   : > { %529 = vmatpush.bf16.msra.mxu2 %v868_v6  ;;  %542 = vmatpush.bf16.msra.mxu3 %v872_v10 }
  0x64   : > { %504 = vmatpush.bf16.msra.mxu0 %v844_v16 }
  0x65   : > { %517 = vmatpush.bf16.msra.mxu1 %v848_v17 }
  0x66   : > { %530 = vmatpush.bf16.msra.mxu2 %v852_v18  ;;  %543 = vmatpush.bf16.msra.mxu3 %v856_v22 }
  0x68   : > { %505 = vmatpush.bf16.msra.mxu0 %v828_v28 }
  0x69   : > { %518 = vmatpush.bf16.msra.mxu1 %v832_v29 }
  0x6a   : > { %531 = vmatpush.bf16.msra.mxu2 %v836_v30  ;;  %544 = vmatpush.bf16.msra.mxu3 %v840_v31 }
  0x6b   : > { %506 = vmatmul.bf16.vlgmr.msra.gmra.mxu0 %v295_v32 }
  0x6c   : > { %519 = vmatmul.bf16.vlgmr.msra.gmra.mxu1 %v295_v32 }
  0x6d   : > { %532 = vmatmul.bf16.vlgmr.msra.gmra.mxu2 %v295_v32  ;;  %545 = vmatmul.bf16.vlgmr.msra.gmra.mxu3 %v295_v32 }
  0xe8   : > { %v507_v34 = vpop.f32.mrf.mxu0 }
  0xe9   : > { %v520_v36 = vpop.f32.mrf.mxu1  ;;  %v508_v45 = vadd.f32 %v507_v34, %v330_v38 }
  0xea   : > { %v521_v39 = vadd.f32 %v520_v36, %v331_v35 }
  0xec   : > { %v554_v46 = vrot.slane %v521_v39, 6 }
  0xee   : > { %v558_v51 = vsel %vm557_vm0, %v508_v45, %v554_v46 }
  0xf0   : > { %v533_v41 = vpop.f32.mrf.mxu2  ;;  %v546_v43 = vpop.f32.mrf.mxu3 }
  0xf1   : > { %v534_v42 = vadd.f32 %v533_v41, %v332_v37  ;;  %v509_v44 = vpop.f32.mrf.mxu0  ;;  %v547_v47 = vadd.f32 %v546_v43, %v333_v40  ;;  %v522_v48 = vpop.f32.mrf.mxu1 }
  0xf3   : > { %v555_v49 = vrot.slane %v534_v42, 4  ;;  %v556_v50 = vrot.slane %v547_v47, 2 }
  0xf4   : > { %568 = sbr.rel (%p1622_p5) target bundleno = 252 (0xfc), region = 48 }
  0xf5   : > { %v560_v52 = vsel %vm559_vm1, %v555_v49, %v556_v50 }
  0xf6   : > { %v562_v53 = vsel %vm561_vm2, %v558_v51, %v560_v52 }
  0xf7   : > { %564 = vst [vmem:[%s1545_s16] sm:$0xff] %v562_v53 }
  0xf8   : > { %v535_v54 = vpop.f32.mrf.mxu2  ;;  %v548_v55 = vpop.f32.mrf.mxu3 }
  0xf9   : > { %v1303_v56 = vmov 0.0  }
  0xfa   : > { %569 = vst [vmem:[#allocation9] sm:$0x1] %v1303_v56 }
  0xfb   : > { %570 = vst [vmem:[#allocation11] sm:$0x1] %v1303_v56 }
  0xfc PF: > { %v571_v57 = vsel %vm557_vm0, %v508_v45, 0.0  ;;  %v588_v58 = vsel %vm557_vm0, %v521_v39, 0.0  ;;  %v605_v59 = vsel %vm557_vm0, %v534_v42, 0.0  ;;  %v622_v60 = vsel %vm557_vm0, %v547_v47, 0.0  ;;  %s996_s23 = sshll.u32 %s1403_s30, 3  ;;  %s659_s10 = sshll.u32 %s1545_s16, 4  ;;  %s660_s10 = int_to_ptr.vmem [resolvable:$true] %s659_s10 }
  0xfd   : > { %v572_v61 = vrot.slane %v571_v57, 4  ;;  %v589_v62 = vrot.slane %v588_v58, 4  ;;  %v606_v63 = vrot.slane %v605_v59, 4  ;;  %v623_v0 = vrot.slane %v622_v60, 4  ;;  %s657_s6 = scalar_lea.hbm %s1608_s3, %s996_s23  ;;  %s646_s27 = scalar_lea.sflag [#allocation4], %s1469_s1 }
  0xfe   : > { %v579_v1 = vmul.f32 %v508_v45, %v508_v45  ;;  %v596_v2 = vmul.f32 %v521_v39, %v521_v39  ;;  %v613_v3 = vmul.f32 %v534_v42, %v534_v42  ;;  %v630_v4 = vmul.f32 %v547_v47, %v547_v47  ;;  %s661_s13 = sshll.u32 %s657_s6, 4  ;;  %s1187_s25 = scalar_lea.hbm %s1608_s3, 32  ;;  %s662_s13 = int_to_ptr.hbm [resolvable:$true] %s661_s13 }
  0xff   : > { %v573_v5 = vadd.f32 %v572_v61, %v571_v57  ;;  %v590_v6 = vadd.f32 %v589_v62, %v588_v58  ;;  %v607_v7 = vadd.f32 %v606_v63, %v605_v59  ;;  %v624_v8 = vadd.f32 %v623_v0, %v622_v60  ;;  %s1181_s17 = sshra.s32 %s662_s13, 4  ;;  %s1182_s17 = int_to_ptr.hbm [resolvable:$true] %s1181_s17 }
 0x100   : > { %v580_v9 = vsel %vm557_vm0, %v579_v1, 0.0  ;;  %v597_v10 = vsel %vm557_vm0, %v596_v2, 0.0  ;;  %v614_v11 = vsel %vm557_vm0, %v613_v3, 0.0  ;;  %v631_v12 = vsel %vm557_vm0, %v630_v4, 0.0  ;;  %s1183_s26 = scalar_lea.hbm %s1182_s17, 8  ;;  %p1188_p8 = scmp.lt.s32.totalorder %s1182_s17, %s1608_s3 }
 0x101   : > { %v574_v13 = vrot.slane %v573_v5, 2  ;;  %v591_v14 = vrot.slane %v590_v6, 2  ;;  %v608_v15 = vrot.slane %v607_v7, 2  ;;  %v625_v16 = vrot.slane %v624_v8, 2  ;;  %p1184_p7 = scmp.ne.s32.totalorder %s1182_s17, %s1183_s26  ;;  %p1189_p12 = scmp.lt.s32.totalorder %s1187_s25, %s1183_s26 }
 0x102   : > { %v581_v17 = vrot.slane %v580_v9, 4  ;;  %v598_v18 = vrot.slane %v597_v10, 4  ;;  %v615_v19 = vrot.slane %v614_v11, 4  ;;  %v632_v20 = vrot.slane %v631_v12, 4 }
 0x103   : > { %v575_v21 = vadd.f32 %v574_v13, %v573_v5  ;;  %v592_v22 = vadd.f32 %v591_v14, %v590_v6  ;;  %v609_v23 = vadd.f32 %v608_v15, %v607_v7  ;;  %v626_v24 = vadd.f32 %v625_v16, %v624_v8  ;;  %p1185_p2 = pnand %p1184_p7, %p1422_p9  ;;  %p1190_p13 = por %p1189_p12, %p1188_p8 }
 0x104   : > { %v582_v25 = vadd.f32 %v581_v17, %v580_v9  ;;  %v599_v26 = vadd.f32 %v598_v18, %v597_v10  ;;  %v616_v27 = vadd.f32 %v615_v19, %v614_v11  ;;  %v633_v28 = vadd.f32 %v632_v20, %v631_v12 }
 0x105   : > { %v576_v29 = vrot.slane %v575_v21, 1  ;;  %v593_v30 = vrot.slane %v592_v22, 1  ;;  %v610_v31 = vrot.slane %v609_v23, 1  ;;  %v627_v32 = vrot.slane %v626_v24, 1  ;;  %p1186_p3 = pneg %p1185_p2 }
 0x107   : > { %p1191_p4 = pnand %p1190_p13, %p1186_p3 }
 0x109   : > { %1194 = shalt.err (!%p1191_p4)
}
 0x10a   : > { %1005 = dma.vmem_to_hbm [thread:$0]  (%p1422_p9), %s660_s10, 128, %s662_s13, %s646_s27   ;;  %v583_v33 = vrot.slane %v582_v25, 2  ;;  %v600_v34 = vrot.slane %v599_v26, 2  ;;  %v617_v35 = vrot.slane %v616_v27, 2  ;;  %v634_v36 = vrot.slane %v633_v28, 2 }
 0x10b   : > { %v577_v37 = vadd.f32 %v576_v29, %v575_v21  ;;  %v594_v38 = vadd.f32 %v593_v30, %v592_v22  ;;  %v611_v39 = vadd.f32 %v610_v31, %v609_v23  ;;  %v628_v45 = vadd.f32 %v627_v32, %v626_v24  ;;  %v639_v51 = vld [vmem:[#allocation9] sm:$0x1]  ;;  %s1304_s8 = smov [#allocation9]   ;;  %s673_s15 = sshll.u32 %s1609_s4, 4  ;;  %v642_v60 = vld [vmem:[#allocation11] sm:$0x1]  ;;  %s674_s15 = int_to_ptr.hbm [resolvable:$true] %s673_s15 }
 0x10c   : > { %v584_v40 = vadd.f32 %v583_v33, %v582_v25  ;;  %v601_v41 = vadd.f32 %v600_v34, %v599_v26  ;;  %v618_v42 = vadd.f32 %v617_v35, %v616_v27  ;;  %v635_v43 = vadd.f32 %v634_v36, %v633_v28  ;;  %s671_s1 = sshll.u32 %s1304_s8, 4  ;;  %s1305_s16 = smov [#allocation11]   ;;  %s672_s1 = int_to_ptr.vmem [resolvable:$true] %s671_s1 }
 0x10d   : > { %v595_v44 = vadd.f32 %v594_v38, %v577_v37  ;;  %s683_s23 = sshll.u32 %s1305_s16, 4  ;;  %s685_s6 = sshll.u32 %s1610_s5, 4  ;;  %s684_s23 = int_to_ptr.vmem [resolvable:$true] %s683_s23  ;;  %s686_s6 = int_to_ptr.hbm [resolvable:$true] %s685_s6 }
 0x10e   : > { %v585_v46 = vrot.slane %v584_v40, 1  ;;  %v602_v47 = vrot.slane %v601_v41, 1  ;;  %v619_v48 = vrot.slane %v618_v42, 1  ;;  %v636_v49 = vrot.slane %v635_v43, 1  ;;  %p1623_p9 = scmp.eq.s32.totalorder %s1403_s30, 3 }
 0x10f   : > { %v612_v50 = vadd.f32 %v611_v39, %v595_v44 }
 0x110   : > { %v586_v52 = vadd.f32 %v585_v46, %v584_v40  ;;  %v603_v53 = vadd.f32 %v602_v47, %v601_v41  ;;  %v620_v54 = vadd.f32 %v619_v48, %v618_v42  ;;  %v637_v57 = vadd.f32 %v636_v49, %v635_v43  ;;  %p1624_p6 = pmov %p1623_p9 }
 0x111   : > { %v629_v55 = vadd.f32 %v628_v45, %v612_v50 }
 0x112   : > { %v604_v56 = vadd.f32 %v603_v53, %v586_v52  ;;  %p1625_p11 = pmov %p1624_p6 }
 0x113   : > { %v640_v58 = vadd.f32 %v639_v51, %v629_v55 }
 0x114   : > { %v621_v59 = vadd.f32 %v620_v54, %v604_v56 }
 0x115   : > { %641 = vst [vmem:[#allocation9] sm:$0x1] %v640_v58 }
 0x116   : > { %v638_v61 = vadd.f32 %v637_v57, %v621_v59  ;;  %1007 = dma.vmem_to_hbm [thread:$0]  (%p1623_p9), %s672_s1, 16, %s674_s15, [#allocation10]  }
 0x118   : > { %v643_v62 = vadd.f32 %v642_v60, %v638_v61 }
 0x11a   : > { %644 = vst [vmem:[#allocation11] sm:$0x1] %v643_v62 }
 0x11b   : > { %1009 = dma.vmem_to_hbm [thread:$0]  (%p1624_p6), %s684_s23, 16, %s686_s6, [#allocation10]  }
 0x11c   : > { %1276 = dma.done.wait (%p1625_p11), [#allocation10], 32   ;;  %p1626_p0 = pmov %p1624_p6 }
 0x11e   : > { %1278 = vsyncadd (%p1626_p0), [#allocation10], 4294967264 }
 0x11f PF: > { %p1037_p1 = scmp.ge.s32.totalorder %s1297_s21, 2  ;;  %s707_s10 = sand.u32 1, %s1285_s18  }
 0x120   : > { %s708_s13 = scalar_lea.sflag [#allocation4], %s707_s10 }
 0x121   : > { %p1027_p5 = pnand %p1037_p1, %p1426_p10 }
 0x123   : > { %p1028_p7 = pneg %p1027_p5 }
 0x125   : > { %1280 = dma.done.wait (%p1028_p7), %s708_s13, 128  }
 0x126   : > { %1282 = vsyncadd (%p1028_p7), %s708_s13, 4294967168  ;;  %s1627_s27 = sld [smem:[#allocation16_spill]]  ;;  %p21_p2 = scmp.ge.s32.totalorder %s1357_s22, 6  }
 0x127   : > { %s1628_s18 = smov %s1289_s19  ;;  %s1629_s19 = smov %s1293_s20 }
 0x128   : > { %s1631_s21 = smov %s1357_s22  ;;  %23 = sbr.rel (!%p21_p2) target bundleno = 10 (0xa), region = 113 }
 0x12c   : > { %s1630_s20 = smov %s1627_s27 }
 0x12d   :  { %714 = vsyncpa [#allocation3], 1 }
 0x12e   :  { %716 = vsyncpa [#allocation3 + $0x1], 1 }
 0x12f   :  { %717 = vsyncpa [#allocation6], 1 }
 0x130   :  { %719 = vsyncpa [#allocation6 + $0x1], 1 }
 0x131   :  { %720 = vsyncpa [#allocation4], 1 }
 0x132   :  { %722 = vsyncpa [#allocation4 + $0x1], 1 }
 0x133   :  { %723 = vsyncpa [#allocation10], 1 }

</bundles_post_ra>
